<compile_context>
chip_gen: v7x
topology: tpu7x:2x2x1
jax: 0.10.0
libtpu: 0.0.40
codegen_flags: <defaults>
</compile_context>

<pallas_src>
import functools

import jax
import jax.numpy as jnp
from jax.experimental import pallas as pl
from jax.experimental.pallas import tpu as pltpu

_LANE = 128
_RAGGED_BLOCK_BYTES = 2 * 1024 * 1024   # target f32 bytes per block (ragged path)
_RAGGED_MAX_BLOCK_LANES = 16384          # lane-dim tile when the last dim is huge


def _tau_ste_kernel(x_ref, o_ref, *, tau_threshold):
    # Pure VPU work: compare in the input dtype, emit 0/1 in the output dtype.
    o_ref[...] = (x_ref[...] > tau_threshold).astype(o_ref.dtype)


def _round_up(v: int, m: int) -> int:
    return ((v + m - 1) // m) * m


def _sublane_multiple(dtype) -> int:
    # Second-minor block-dim multiple: 8 for 4-byte, 16 for 2-byte, 32 for 1-byte.
    return max(8, 32 // jnp.dtype(dtype).itemsize)


def _chip_params():
    """(max_block_rows_for_128lane_path, vmem_limit_bytes), chip-aware."""
    kind = ""
    try:
        kind = jax.devices()[0].device_kind.lower()
    except Exception:
        pass
    if "v7" in kind:
        # 8192 x 128 f32 = 4 MiB per buffer; in+out double-buffered <= 16 MiB.
        return 8192, 24 * 1024 * 1024
    # v5e / v6e (and unknown): 2 MiB per buffer, well inside the 16 MiB scoped VMEM.
    return 4096, 16 * 1024 * 1024


def tau_ste(x, tau_threshold: float = 0.0, out_dtype=jnp.float32):
    """Pallas TPU implementation of TauSTE.forward: (x > tau).astype(out_dtype).

    out_dtype defaults to float32 to match PyTorch's `.float()`; pass the input
    dtype instead to halve output HBM traffic if downstream code tolerates it.
    """
    orig_shape = x.shape
    n = int(x.size)
    if n == 0:  # guard: zero-size grid / BlockSpec is invalid
        return jnp.zeros(orig_shape, out_dtype)

    max_block_rows, vmem_limit = _chip_params()
    sub_m = _sublane_multiple(x.dtype)
    kernel = functools.partial(_tau_ste_kernel, tau_threshold=float(tau_threshold))
    cost = pl.CostEstimate(
        flops=n,
        transcendentals=0,
        bytes_accessed=n * x.dtype.itemsize + n * jnp.dtype(out_dtype).itemsize,
    )

    if n % _LANE == 0:
        # ---- Fast path: lane-dense (rows, 128) view, unmasked full-width stores.
        rows = n // _LANE
        x2d = x.reshape(rows, _LANE)  # free reshape (contiguous)
        if rows < 2 * sub_m:
            # Single block equal to the full array (legal even if rows % sub_m != 0).
            block_rows = rows
        else:
            # At least 2 blocks so the "parallel" axis shards across v7x's two TCs;
            # capped at the chip-specific block size. Edge block is masked.
            block_rows = min(max_block_rows, _round_up(pl.cdiv(rows, 2), sub_m))
        grid = (pl.cdiv(rows, block_rows),)

        out2d = pl.pallas_call(
            kernel,
            out_shape=jax.ShapeDtypeStruct((rows, _LANE), out_dtype),
            grid=grid,
            in_specs=[pl.BlockSpec((block_rows, _LANE), lambda r: (r, 0))],
            out_specs=pl.BlockSpec((block_rows, _LANE), lambda r: (r, 0)),
            compiler_params=pltpu.CompilerParams(
                dimension_semantics=("parallel",),
                vmem_limit_bytes=vmem_limit,
            ),
            cost_estimate=cost,
        )(x2d)
        return out2d.reshape(orig_shape)

    # ---- Ragged path (n % 128 != 0): free 2D view (lead, last); tile both dims
    # with masked edges. Single HBM pass, no pad / concat / slice. Stores on a
    # narrow last dim are masked (vst.msk) -- unavoidable for ragged shapes but
    # still strictly cheaper than extra full-array copies.
    last = orig_shape[-1] if x.ndim >= 1 else 1
    lead = n // last
    x2d = x.reshape(lead, last)

    if last <= _RAGGED_MAX_BLOCK_LANES:
        block_last = last                      # equals full dim -> always legal
    else:
        block_last = _RAGGED_MAX_BLOCK_LANES   # multiple of 128; lane edge masked

    rows_budget = max(1, _RAGGED_BLOCK_BYTES // (block_last * 4))
    if rows_budget >= lead:
        block_lead = lead                      # equals full dim -> always legal
    else:
        block_lead = max(sub_m, (rows_budget // sub_m) * sub_m)

    grid = (pl.cdiv(lead, block_lead), pl.cdiv(last, block_last))
    out2d = pl.pallas_call(
        kernel,
        out_shape=jax.ShapeDtypeStruct((lead, last), out_dtype),
        grid=grid,
        in_specs=[pl.BlockSpec((block_lead, block_last), lambda i, j: (i, j))],
        out_specs=pl.BlockSpec((block_lead, block_last), lambda i, j: (i, j)),
        compiler_params=pltpu.CompilerParams(
            dimension_semantics=("parallel", "parallel"),
            vmem_limit_bytes=vmem_limit,
        ),
        cost_estimate=cost,
    )(x2d)
    return out2d.reshape(orig_shape)


# ---------------------------------------------------------------------------
# Pure-JAX reference of the PyTorch forward semantics.
# ---------------------------------------------------------------------------
def _ref(x, tau_threshold=0.0):
    return (x > tau_threshold).astype(jnp.float32)


if __name__ == "__main__":
    key = jax.random.PRNGKey(0)
    k1, k2, k3, k4 = jax.random.split(key, 4)

    # Case 1: module default threshold, (B, S, H) input; n % 128 == 0, single block.
    x1 = jax.random.normal(k1, (2, 8, 32), dtype=jnp.float32)
    out1 = tau_ste(x1, 0.0)
    jax.block_until_ready(out1)
    assert out1.shape == x1.shape and out1.dtype == jnp.float32
    assert jnp.array_equal(out1, _ref(x1, 0.0))

    # Case 2: non-zero threshold, ragged shape (n % 128 != 0) -> masked-edge 2D path.
    x2 = jax.random.normal(k2, (3, 7, 5), dtype=jnp.float32)
    out2 = tau_ste(x2, 0.25)
    jax.block_until_ready(out2)
    assert out2.shape == x2.shape and out2.dtype == jnp.float32
    assert jnp.array_equal(out2, _ref(x2, 0.25))

    # Case 3: n % 128 == 0 but rows % block_rows != 0 -> exercises the masked
    # edge block of the lane-dense fast path (rows=180, block=96, grid=2).
    x3 = jax.random.normal(k3, (5, 36, 128), dtype=jnp.float32)
    out3 = tau_ste(x3, -0.1)
    jax.block_until_ready(out3)
    assert out3.shape == x3.shape and out3.dtype == jnp.float32
    assert jnp.array_equal(out3, _ref(x3, -0.1))

    # Case 4: bf16 input (sublane multiple 16) with a partial edge block.
    x4 = jax.random.normal(k4, (4, 100, 64), dtype=jnp.bfloat16)
    out4 = tau_ste(x4, 0.1)
    jax.block_until_ready(out4)
    assert out4.shape == x4.shape and out4.dtype == jnp.float32
    assert jnp.array_equal(out4, _ref(x4, 0.1))

    print("KERNEL_OK")
</pallas_src>

<mosaic_0001>
module attributes {stable_mosaic.version = 11 : i64} {
  func.func @_tau_ste_kernel(%arg0: i32, %arg1: memref<4x128xf32, #tpu.memory_space<vmem>>, %arg2: memref<4x128xf32, #tpu.memory_space<vmem>>) attributes {dimension_semantics = [#tpu.dimension_semantics<parallel>], iteration_bounds = array<i64: 1>, scalar_prefetch = 0 : i64, scratch_operands = 0 : i64, tpu.core_type = #tpu.core_type<tc>, window_params = [{transform_indices = @transform_0, window_bounds = array<i64: 4, 128>}, {transform_indices = @transform_1, window_bounds = array<i64: 4, 128>}]} {
    %c0 = arith.constant 0 : index
    %c0_0 = arith.constant 0 : index
    %0 = vector.load %arg1[%c0, %c0_0] : memref<4x128xf32, #tpu.memory_space<vmem>>, vector<4x128xf32>
    %cst = arith.constant 0.000000e+00 : f32
    %1 = vector.broadcast %cst : f32 to vector<4x128xf32>
    %2 = arith.cmpf ogt, %0, %1 : vector<4x128xf32>
    %3 = arith.extui %2 : vector<4x128xi1> to vector<4x128xi32>
    %4 = arith.sitofp %3 : vector<4x128xi32> to vector<4x128xf32>
    %c0_1 = arith.constant 0 : index
    %c0_2 = arith.constant 0 : index
    %5 = vector.load %arg2[%c0_1, %c0_2] : memref<4x128xf32, #tpu.memory_space<vmem>>, vector<4x128xf32>
    tpu.vector_store %arg2[%c0_1, %c0_2], %4 {strides = array<i32>} : memref<4x128xf32, #tpu.memory_space<vmem>>, vector<4x128xf32>,
    return
  }
  func.func @transform_0(%arg0: i32) -> (i32, i32) {
    %c0_i32 = arith.constant 0 : i32
    %c0_i32_0 = arith.constant 0 : i32
    return %arg0, %c0_i32 : i32, i32
  }
  func.func @transform_1(%arg0: i32) -> (i32, i32) {
    %c0_i32 = arith.constant 0 : i32
    %c0_i32_0 = arith.constant 0 : i32
    return %arg0, %c0_i32 : i32, i32
  }
}

</mosaic_0001>

<bundles_post_ra>
// kernel: tpu_custom_call.1
= control target key start
LH: loop header
LB: loop body
LE: loop exit
PB: predicated region body
PF: predicated region fallthrough
CT: control target
= control target key end

     0   :  { %6 = vsyncpa [#allocation3], 0  ;;  %s130_s0 = inlined_call_operand.hbm [shape: f32[4,128], index: 0, kind: input, shape index: {}]   ;;  %s131_s1 = inlined_call_operand.hbm [shape: f32[4,128], index: 1, kind: output, shape index: {}]  }
   0x1   :  { %7 = vsyncpa [#allocation4], 0  ;;  %s93_s6 = smov [#allocation2]   ;;  %s45_s10 = scalar_lea.hbm %s130_s0, 64 }
   0x2   :  { %s14_s7 = sshll.u32 %s93_s6, 4  ;;  %p46_p0 = scmp.ne.s32.totalorder %s130_s0, %s45_s10  ;;  %s15_s7 = int_to_ptr.vmem [resolvable:$true] %s14_s7 }
   0x3   :  { %p49_p1 = scmp.lt.u32.totalorder %s45_s10, %s130_s0 }
   0x5   :  { %p51_p2 = pnand %p49_p1, %p46_p0 }
   0x7   :  { %54 = shalt.err (!%p51_p2)
}
   0x8   :  { %s55_s15 = scalar_lea.vmem %s15_s7, 64  ;;  %p60_p4 = scmp.lt.s32.totalorder %s15_s7, %s15_s7 }
   0x9   :  { %p56_p3 = scmp.ne.s32.totalorder %s15_s7, %s55_s15  ;;  %p61_p5 = scmp.lt.s32.totalorder %s55_s15, %s55_s15 }
   0xb   :  { %p62_p6 = por %p61_p5, %p60_p4 }
   0xd   :  { %p63_p7 = pnand %p62_p6, %p56_p3 }
   0xf   :  { %66 = shalt.err (!%p63_p7)
}
  0x10   :  { %17 = dma.hbm_to_vmem [thread:$0]  %s130_s0, 64, %s15_s7, [#allocation3]  }
  0x11   :  { %89 = dma.done.wait [#allocation3], 64  }
  0x12   :  { %90 = vsyncadd [#allocation3], 4294967232  ;;  %s94_s18 = smov [#allocation5]   ;;  %v21_v0 = vld [vmem:[#allocation2] sm:$0xf]  ;;  %v95_v1 = vmov 0.0  }
  0x13   :  { %s32_s19 = sshll.u32 %s94_s18, 4  ;;  %vm22_vm0 = vcmp.gt.f32.partialorder %v21_v0, 0.0  ;;  %s33_s19 = int_to_ptr.vmem [resolvable:$true] %s32_s19 }
  0x14   :  { %v41_v2 = vsel %vm22_vm0, 1.0, %v95_v1  ;;  %s67_s20 = scalar_lea.vmem %s33_s19, 64  ;;  %p72_p9 = scmp.lt.s32.totalorder %s33_s19, %s33_s19 }
  0x15   :  { %25 = vst [vmem:[#allocation5] sm:$0xf] %v41_v2  ;;  %p68_p8 = scmp.ne.s32.totalorder %s33_s19, %s67_s20  ;;  %p73_p10 = scmp.lt.s32.totalorder %s67_s20, %s67_s20 }
  0x17   :  { %p74_p11 = por %p73_p10, %p72_p9 }
  0x19   :  { %p75_p12 = pnand %p74_p11, %p68_p8 }
  0x1b   :  { %78 = shalt.err (!%p75_p12)
}
  0x1c   :  { %s79_s0 = scalar_lea.hbm %s131_s1, 64 }
  0x1d   :  { %p80_p13 = scmp.ne.s32.totalorder %s131_s1, %s79_s0  ;;  %p83_p0 = scmp.lt.u32.totalorder %s79_s0, %s131_s1 }
  0x1f   :  { %p85_p1 = pnand %p83_p0, %p80_p13 }
  0x21   :  { %88 = shalt.err (!%p85_p1)
}
  0x22   :  { %35 = dma.vmem_to_hbm [thread:$0]  %s33_s19, 64, %s131_s1, [#allocation4]  }
  0x23   :  { %91 = dma.done.wait [#allocation4], 64  }
  0x24   :  { %92 = vsyncadd [#allocation4], 4294967232 }
  0x25   :  { %39 = vsyncpa [#allocation3], 1 }
  0x26   :  { %40 = vsyncpa [#allocation4], 1 }

</bundles_post_ra>
